<compile_context>
chip_gen: v7x
topology: tpu7x:2x2x1
jax: 0.10.0
libtpu: 0.0.40
codegen_flags: <defaults>
</compile_context>

<pallas_src>
import jax
import jax.numpy as jnp
from jax.experimental import pallas as pl
from jax.experimental.pallas import tpu as pltpu

# --------------------------------------------------------------------------
# Model hyperparameters (match the PyTorch defaults)
# --------------------------------------------------------------------------
LATENT_DIM = 2
COND_DIM = 4
USE_COND = True
WIDTH = 64
DEPTH = 2                 # hidden (Linear, ReLU) blocks after the first
DATA_DIM = 640

IN_DIM = LATENT_DIM + (COND_DIM if USE_COND else 0)     # 6
PAD_IN = 8                # fused z|cond input padded to 8 (sublane aligned)

# VMEM budgeting (conservative so the same tile works on v5e/v6e/v7x).
_VMEM_LIMIT_BYTES = 48 * 1024 * 1024     # explicit scoped limit for Mosaic
_TILE_VMEM_BUDGET = 24 * 1024 * 1024     # what tile sizing targets
_BYTES_PER_ROW = (2 * DATA_DIM * 4       # double-buffered f32 output block
                  + DATA_DIM * 4         # f32 matmul-result temp
                  + 2 * 128 * 2          # double-buffered bf16 input (lane-padded)
                  + 6 * WIDTH * 4)       # hidden-activation temps (slack)


def _round_up(x, m):
    return ((x + m - 1) // m) * m


def _const_spec(shape):
    """BlockSpec for a VMEM-resident constant block (weights/biases).

    Constant block index -> one buffer is enough; Buffered(1) frees the
    pointless double-buffer VMEM.  Falls back if the installed jax does not
    accept the pipeline_mode kwarg.
    """
    index_map = lambda i: (0,) * len(shape)
    try:
        return pl.BlockSpec(shape, index_map, pipeline_mode=pl.Buffered(1))
    except (AttributeError, TypeError):
        return pl.BlockSpec(shape, index_map)


# --------------------------------------------------------------------------
# Pallas kernel: fused 4-layer MLP (Linear+ReLU x3, final Linear)
# --------------------------------------------------------------------------
def decoder_mlp_kernel(x_ref,
                       w1_ref, b1_ref,
                       w2_ref, b2_ref,
                       w3_ref, b3_ref,
                       w4_ref, b4_ref,
                       out_ref):
    cdt = w2_ref.dtype        # matmul operand dtype (bf16 default, f32 optional)

    # Layer 1 (concat already fused in the wrapper: x = [z | cond | 0-pad]).
    h = jnp.dot(x_ref[...], w1_ref[...],
                preferred_element_type=jnp.float32) + b1_ref[...]
    h = jnp.maximum(h, 0.0)                                   # ReLU (f32, VPU)

    h = jnp.dot(h.astype(cdt), w2_ref[...],
                preferred_element_type=jnp.float32) + b2_ref[...]
    h = jnp.maximum(h, 0.0)

    h = jnp.dot(h.astype(cdt), w3_ref[...],
                preferred_element_type=jnp.float32) + b3_ref[...]
    h = jnp.maximum(h, 0.0)

    # Final 64x640 layer (~85% of FLOPs): bf16 operands, f32 accumulation.
    out = jnp.dot(h.astype(cdt), w4_ref[...],
                  preferred_element_type=jnp.float32) + b4_ref[...]
    out_ref[...] = out.astype(out_ref.dtype)


def _choose_batch_tile(B, requested):
    """Pick the per-grid-step batch tile.

    - Capped by a per-row VMEM budget (safe on v7x's 64 MiB physical VMEM).
    - Small batches: one step (overhead dominated anyway).
    - Moderate batches (256 < B < 1024): 2 steps so both v7x TCs get work.
    - Large batches: big tiles to amortise the ~0.35us/step overhead, but
      always >= 4 grid steps (2 per v7x TensorCore) so writeback overlaps
      compute and neither core idles.
    """
    max_tb = max(256, (_TILE_VMEM_BUDGET // _BYTES_PER_ROW) // 128 * 128)
    requested = min(_round_up(max(requested, 8), 8), max_tb)
    if B <= 256:
        return _round_up(B, 8)
    if B < 1024:
        return min(_round_up(-(-B // 2), 8), max_tb)
    tb = min(requested, max_tb)
    if -(-B // tb) < 4:
        tb = _round_up(-(-B // 4), 8)
    return min(tb, max_tb)


def decoder_forward(z, cond, params, *, use_cond=USE_COND, batch_tile=2048,
                    matmul_dtype=jnp.bfloat16, out_dtype=jnp.float32):
    """Pallas-backed Decoder.forward(z, cond).

    z:    [B, latent_dim] float32
    cond: [B, cond_dim]   float32
    returns: [B, DATA_DIM] in out_dtype (float32 by default, matching PyTorch)
    """
    B = z.shape[0]
    (w1, b1), (w2, b2), (w3, b3), (w4, b4) = params
    cdt = jnp.dtype(matmul_dtype)

    # Fuse the concat in the wrapper: x = [z | cond | zero-pad] of width 8.
    x = jnp.concatenate([z, cond], axis=-1) if use_cond else z
    in_dim = x.shape[-1]

    tb = _choose_batch_tile(B, batch_tile)
    Bp = _round_up(B, tb)
    x = jnp.pad(x, ((0, Bp - B), (0, PAD_IN - in_dim))).astype(cdt)

    # Pre-cast weights to the matmul dtype once here (no per-step in-kernel
    # convert); W1 zero-padded to PAD_IN rows to match the padded input.
    w1p = jnp.pad(w1, ((0, PAD_IN - in_dim), (0, 0))).astype(cdt)
    w2c = w2.astype(cdt)
    w3c = w3.astype(cdt)
    w4c = w4.astype(cdt)
    b1f, b2f, b3f, b4f = (jnp.asarray(b, jnp.float32).reshape(1, -1)
                          for b in (b1, b2, b3, b4))

    grid = (Bp // tb,)

    layer_flops = PAD_IN * WIDTH + DEPTH * WIDTH * WIDTH + WIDTH * DATA_DIM
    flops = 2 * Bp * layer_flops
    weight_bytes = (cdt.itemsize * layer_flops
                    + 4 * ((1 + DEPTH) * WIDTH + DATA_DIM))
    bytes_accessed = (cdt.itemsize * Bp * PAD_IN
                      + jnp.dtype(out_dtype).itemsize * Bp * DATA_DIM
                      + weight_bytes)

    out = pl.pallas_call(
        decoder_mlp_kernel,
        out_shape=jax.ShapeDtypeStruct((Bp, DATA_DIM), out_dtype),
        grid_spec=pltpu.PrefetchScalarGridSpec(
            num_scalar_prefetch=0,
            grid=grid,
            in_specs=[
                pl.BlockSpec((tb, PAD_IN), lambda i: (i, 0)),     # fused input
                _const_spec((PAD_IN, WIDTH)),                     # w1 (padded)
                _const_spec((1, WIDTH)),                          # b1
                _const_spec((WIDTH, WIDTH)),                      # w2
                _const_spec((1, WIDTH)),                          # b2
                _const_spec((WIDTH, WIDTH)),                      # w3
                _const_spec((1, WIDTH)),                          # b3
                _const_spec((WIDTH, DATA_DIM)),                   # w4
                _const_spec((1, DATA_DIM)),                       # b4
            ],
            # Full 640-wide (5x128) lane-dense output block -> unmasked stores.
            out_specs=pl.BlockSpec((tb, DATA_DIM), lambda i: (i, 0)),
        ),
        compiler_params=pltpu.CompilerParams(
            dimension_semantics=("parallel",),
            vmem_limit_bytes=_VMEM_LIMIT_BYTES),
        cost_estimate=pl.CostEstimate(
            flops=flops, transcendentals=0, bytes_accessed=bytes_accessed),
    )(x, w1p, b1f, w2c, b2f, w3c, b3f, w4c, b4f)

    return out[:B] if Bp != B else out


# --------------------------------------------------------------------------
# Deterministic parameter init (mimics nn.Linear default U(-1/sqrt(fan_in),..))
# Weights stored as [in, out] so the kernel can use x @ W directly
# (equivalent to PyTorch's x @ W.T with W of shape [out, in]).
# --------------------------------------------------------------------------
def init_params(key):
    dims = [(IN_DIM, WIDTH)]
    dims += [(WIDTH, WIDTH)] * DEPTH
    dims += [(WIDTH, DATA_DIM)]
    params = []
    for (fan_in, fan_out) in dims:
        key, kw, kb = jax.random.split(key, 3)
        bound = 1.0 / jnp.sqrt(jnp.float32(fan_in))
        w = jax.random.uniform(kw, (fan_in, fan_out), jnp.float32,
                               minval=-bound, maxval=bound)
        b = jax.random.uniform(kb, (1, fan_out), jnp.float32,
                               minval=-bound, maxval=bound)
        params.append((w, b))
    return params


# Pure-JAX f32 reference (HIGHEST precision dots) for correctness checks.
def decoder_ref(z, cond, params, use_cond=USE_COND):
    x = jnp.concatenate([z, cond], axis=-1) if use_cond else z
    (w1, b1), (w2, b2), (w3, b3), (w4, b4) = params
    dot = lambda a, b: jnp.dot(a, b, precision=jax.lax.Precision.HIGHEST)
    h = jnp.maximum(dot(x, w1) + b1, 0.0)
    h = jnp.maximum(dot(h, w2) + b2, 0.0)
    h = jnp.maximum(dot(h, w3) + b3, 0.0)
    return dot(h, w4) + b4


if __name__ == "__main__":
    key = jax.random.PRNGKey(0)
    kp, kz, kc = jax.random.split(key, 3)
    params = init_params(kp)

    def run_case(B, **kw):
        z = jax.random.normal(jax.random.fold_in(kz, B), (B, LATENT_DIM), jnp.float32)
        c = jax.random.normal(jax.random.fold_in(kc, B), (B, COND_DIM), jnp.float32)
        out = jax.block_until_ready(decoder_forward(z, c, params, **kw))
        ref = decoder_ref(z, c, params)
        assert out.shape == (B, DATA_DIM)
        return out, ref

    # Case 1: ragged small batch, single grid step, f32 matmul path -> parity.
    out1, ref1 = run_case(19, matmul_dtype=jnp.float32)
    assert jnp.allclose(out1, ref1, atol=1e-3, rtol=1e-3), "f32 parity mismatch"

    # Case 2: 2-step grid (both v7x TensorCores), default bf16 matmul path.
    out2, ref2 = run_case(512)
    assert jnp.allclose(out2, ref2, atol=3e-2, rtol=3e-2), "bf16 mismatch (case 2)"

    # Case 3: >=4-step grid with a ragged batch (padding + slice-back).
    out3, ref3 = run_case(1030)
    assert jnp.allclose(out3, ref3, atol=3e-2, rtol=3e-2), "bf16 mismatch (case 3)"

    print("KERNEL_OK")
</pallas_src>

<mosaic_0001>
module attributes {stable_mosaic.version = 11 : i64} {
  func.func @decoder_mlp_kernel(%arg0: i32, %arg1: memref<24x8xf32, #tpu.memory_space<vmem>>, %arg2: memref<8x64xf32, #tpu.memory_space<vmem>>, %arg3: memref<1x64xf32, #tpu.memory_space<vmem>>, %arg4: memref<64x64xf32, #tpu.memory_space<vmem>>, %arg5: memref<1x64xf32, #tpu.memory_space<vmem>>, %arg6: memref<64x64xf32, #tpu.memory_space<vmem>>, %arg7: memref<1x64xf32, #tpu.memory_space<vmem>>, %arg8: memref<64x640xf32, #tpu.memory_space<vmem>>, %arg9: memref<1x640xf32, #tpu.memory_space<vmem>>, %arg10: memref<24x640xf32, #tpu.memory_space<vmem>>) attributes {dimension_semantics = [#tpu.dimension_semantics<parallel>], iteration_bounds = array<i64: 1>, scalar_prefetch = 0 : i64, scratch_operands = 0 : i64, tpu.core_type = #tpu.core_type<tc>, window_params = [{transform_indices = @transform_0, window_bounds = array<i64: 24, 8>}, {pipeline_mode = #tpu.pipeline_mode<synchronous>, transform_indices = @transform_1, window_bounds = array<i64: 8, 64>}, {pipeline_mode = #tpu.pipeline_mode<synchronous>, transform_indices = @transform_2, window_bounds = array<i64: 1, 64>}, {pipeline_mode = #tpu.pipeline_mode<synchronous>, transform_indices = @transform_3, window_bounds = array<i64: 64, 64>}, {pipeline_mode = #tpu.pipeline_mode<synchronous>, transform_indices = @transform_4, window_bounds = array<i64: 1, 64>}, {pipeline_mode = #tpu.pipeline_mode<synchronous>, transform_indices = @transform_5, window_bounds = array<i64: 64, 64>}, {pipeline_mode = #tpu.pipeline_mode<synchronous>, transform_indices = @transform_6, window_bounds = array<i64: 1, 64>}, {pipeline_mode = #tpu.pipeline_mode<synchronous>, transform_indices = @transform_7, window_bounds = array<i64: 64, 640>}, {pipeline_mode = #tpu.pipeline_mode<synchronous>, transform_indices = @transform_8, window_bounds = array<i64: 1, 640>}, {transform_indices = @transform_9, window_bounds = array<i64: 24, 640>}]} {
    %c0 = arith.constant 0 : index
    %c0_0 = arith.constant 0 : index
    %0 = vector.load %arg1[%c0, %c0_0] : memref<24x8xf32, #tpu.memory_space<vmem>>, vector<24x8xf32>
    %c0_1 = arith.constant 0 : index
    %c0_2 = arith.constant 0 : index
    %1 = vector.load %arg2[%c0_1, %c0_2] : memref<8x64xf32, #tpu.memory_space<vmem>>, vector<8x64xf32>
    %cst = arith.constant dense<0.000000e+00> : vector<24x64xf32>
    %2 = tpu.matmul %0, %1, %cst {dimension_numbers = #tpu.dot_dimension_numbers<[1], [0], [0], [1], [0, 0, 1, 1], [], []>} : vector<24x8xf32>, vector<8x64xf32>, vector<24x64xf32> -> vector<24x64xf32>
    %c0_3 = arith.constant 0 : index
    %c0_4 = arith.constant 0 : index
    %3 = vector.load %arg3[%c0_3, %c0_4] : memref<1x64xf32, #tpu.memory_space<vmem>>, vector<1x64xf32>
    %4 = vector.broadcast %3 : vector<1x64xf32> to vector<24x64xf32>
    %5 = arith.addf %2, %4 : vector<24x64xf32>
    %cst_5 = arith.constant 0.000000e+00 : f32
    %6 = vector.broadcast %cst_5 : f32 to vector<24x64xf32>
    %7 = arith.maximumf %5, %6 : vector<24x64xf32>
    %c0_6 = arith.constant 0 : index
    %c0_7 = arith.constant 0 : index
    %8 = vector.load %arg4[%c0_6, %c0_7] : memref<64x64xf32, #tpu.memory_space<vmem>>, vector<64x64xf32>
    %cst_8 = arith.constant dense<0.000000e+00> : vector<24x64xf32>
    %9 = tpu.matmul %7, %8, %cst_8 {dimension_numbers = #tpu.dot_dimension_numbers<[1], [0], [0], [1], [0, 0, 1, 1], [], []>} : vector<24x64xf32>, vector<64x64xf32>, vector<24x64xf32> -> vector<24x64xf32>
    %c0_9 = arith.constant 0 : index
    %c0_10 = arith.constant 0 : index
    %10 = vector.load %arg5[%c0_9, %c0_10] : memref<1x64xf32, #tpu.memory_space<vmem>>, vector<1x64xf32>
    %11 = vector.broadcast %10 : vector<1x64xf32> to vector<24x64xf32>
    %12 = arith.addf %9, %11 : vector<24x64xf32>
    %cst_11 = arith.constant 0.000000e+00 : f32
    %13 = vector.broadcast %cst_11 : f32 to vector<24x64xf32>
    %14 = arith.maximumf %12, %13 : vector<24x64xf32>
    %c0_12 = arith.constant 0 : index
    %c0_13 = arith.constant 0 : index
    %15 = vector.load %arg6[%c0_12, %c0_13] : memref<64x64xf32, #tpu.memory_space<vmem>>, vector<64x64xf32>
    %cst_14 = arith.constant dense<0.000000e+00> : vector<24x64xf32>
    %16 = tpu.matmul %14, %15, %cst_14 {dimension_numbers = #tpu.dot_dimension_numbers<[1], [0], [0], [1], [0, 0, 1, 1], [], []>} : vector<24x64xf32>, vector<64x64xf32>, vector<24x64xf32> -> vector<24x64xf32>
    %c0_15 = arith.constant 0 : index
    %c0_16 = arith.constant 0 : index
    %17 = vector.load %arg7[%c0_15, %c0_16] : memref<1x64xf32, #tpu.memory_space<vmem>>, vector<1x64xf32>
    %18 = vector.broadcast %17 : vector<1x64xf32> to vector<24x64xf32>
    %19 = arith.addf %16, %18 : vector<24x64xf32>
    %cst_17 = arith.constant 0.000000e+00 : f32
    %20 = vector.broadcast %cst_17 : f32 to vector<24x64xf32>
    %21 = arith.maximumf %19, %20 : vector<24x64xf32>
    %c0_18 = arith.constant 0 : index
    %c0_19 = arith.constant 0 : index
    %22 = vector.load %arg8[%c0_18, %c0_19] : memref<64x640xf32, #tpu.memory_space<vmem>>, vector<64x640xf32>
    %cst_20 = arith.constant dense<0.000000e+00> : vector<24x640xf32>
    %23 = tpu.matmul %21, %22, %cst_20 {dimension_numbers = #tpu.dot_dimension_numbers<[1], [0], [0], [1], [0, 0, 1, 1], [], []>} : vector<24x64xf32>, vector<64x640xf32>, vector<24x640xf32> -> vector<24x640xf32>
    %c0_21 = arith.constant 0 : index
    %c0_22 = arith.constant 0 : index
    %24 = vector.load %arg9[%c0_21, %c0_22] : memref<1x640xf32, #tpu.memory_space<vmem>>, vector<1x640xf32>
    %25 = vector.broadcast %24 : vector<1x640xf32> to vector<24x640xf32>
    %26 = arith.addf %23, %25 : vector<24x640xf32>
    %c0_23 = arith.constant 0 : index
    %c0_24 = arith.constant 0 : index
    %27 = vector.load %arg10[%c0_23, %c0_24] : memref<24x640xf32, #tpu.memory_space<vmem>>, vector<24x640xf32>
    tpu.vector_store %arg10[%c0_23, %c0_24], %26 {strides = array<i32>} : memref<24x640xf32, #tpu.memory_space<vmem>>, vector<24x640xf32>,
    return
  }
  func.func @transform_0(%arg0: i32) -> (i32, i32) {
    %c0_i32 = arith.constant 0 : i32
    %c0_i32_0 = arith.constant 0 : i32
    return %arg0, %c0_i32 : i32, i32
  }
  func.func @transform_1(%arg0: i32) -> (i32, i32) {
    %c0_i32 = arith.constant 0 : i32
    %c0_i32_0 = arith.constant 0 : i32
    %c0_i32_1 = arith.constant 0 : i32
    return %c0_i32, %c0_i32_0 : i32, i32
  }
  func.func @transform_2(%arg0: i32) -> (i32, i32) {
    %c0_i32 = arith.constant 0 : i32
    %c0_i32_0 = arith.constant 0 : i32
    %c0_i32_1 = arith.constant 0 : i32
    return %c0_i32, %c0_i32_0 : i32, i32
  }
  func.func @transform_3(%arg0: i32) -> (i32, i32) {
    %c0_i32 = arith.constant 0 : i32
    %c0_i32_0 = arith.constant 0 : i32
    %c0_i32_1 = arith.constant 0 : i32
    return %c0_i32, %c0_i32_0 : i32, i32
  }
  func.func @transform_4(%arg0: i32) -> (i32, i32) {
    %c0_i32 = arith.constant 0 : i32
    %c0_i32_0 = arith.constant 0 : i32
    %c0_i32_1 = arith.constant 0 : i32
    return %c0_i32, %c0_i32_0 : i32, i32
  }
  func.func @transform_5(%arg0: i32) -> (i32, i32) {
    %c0_i32 = arith.constant 0 : i32
    %c0_i32_0 = arith.constant 0 : i32
    %c0_i32_1 = arith.constant 0 : i32
    return %c0_i32, %c0_i32_0 : i32, i32
  }
  func.func @transform_6(%arg0: i32) -> (i32, i32) {
    %c0_i32 = arith.constant 0 : i32
    %c0_i32_0 = arith.constant 0 : i32
    %c0_i32_1 = arith.constant 0 : i32
    return %c0_i32, %c0_i32_0 : i32, i32
  }
  func.func @transform_7(%arg0: i32) -> (i32, i32) {
    %c0_i32 = arith.constant 0 : i32
    %c0_i32_0 = arith.constant 0 : i32
    %c0_i32_1 = arith.constant 0 : i32
    return %c0_i32, %c0_i32_0 : i32, i32
  }
  func.func @transform_8(%arg0: i32) -> (i32, i32) {
    %c0_i32 = arith.constant 0 : i32
    %c0_i32_0 = arith.constant 0 : i32
    %c0_i32_1 = arith.constant 0 : i32
    return %c0_i32, %c0_i32_0 : i32, i32
  }
  func.func @transform_9(%arg0: i32) -> (i32, i32) {
    %c0_i32 = arith.constant 0 : i32
    %c0_i32_0 = arith.constant 0 : i32
    return %arg0, %c0_i32 : i32, i32
  }
}

</mosaic_0001>

<bundles_post_ra>
// kernel: tpu_custom_call.1
= control target key start
LH: loop header
LB: loop body
LE: loop exit
PB: predicated region body
PF: predicated region fallthrough
CT: control target
= control target key end

     0   :  { %14 = vsyncpa [#allocation3], 0  ;;  %s1284_s0 = inlined_call_operand.vmem [shape: f32[24,8], index: 0, kind: input, shape index: {}]   ;;  %s1285_s1 = inlined_call_operand.vmem [shape: f32[8,64], index: 1, kind: input, shape index: {}]   ;;  %s1286_s2 = inlined_call_operand.vmem [shape: f32[1,64], index: 2, kind: input, shape index: {}]   ;;  %s1287_s3 = inlined_call_operand.hbm [shape: f32[64,64], index: 3, kind: input, shape index: {}]   ;;  %s1288_s4 = inlined_call_operand.vmem [shape: f32[1,64], index: 4, kind: input, shape index: {}]   ;;  %s1289_s5 = inlined_call_operand.hbm [shape: f32[64,64], index: 5, kind: input, shape index: {}]   ;;  %s1290_s6 = inlined_call_operand.vmem [shape: f32[1,64], index: 6, kind: input, shape index: {}]   ;;  %s1291_s7 = inlined_call_operand.hbm [shape: f32[64,640], index: 7, kind: input, shape index: {}]   ;;  %s1292_s8 = inlined_call_operand.vmem [shape: f32[1,640], index: 8, kind: input, shape index: {}]   ;;  %s1293_s9 = inlined_call_operand.hbm [shape: f32[24,640], index: 9, kind: output, shape index: {}]  }
   0x1   :  { %15 = vsyncpa [#allocation6], 0 }
   0x2   :  { %16 = vsyncpa [#allocation4], 0  ;;  %s1073_s30 = smov [#allocation5]   ;;  %s1074_s11 = smov [#allocation2]  }
   0x3   :  { %s42_s10 = sshll.u32 %s1073_s30, 4  ;;  %s28_s12 = sshll.u32 %s1074_s11, 4  ;;  %s43_s10 = int_to_ptr.vmem [resolvable:$true] %s42_s10  ;;  %s1134_s12 = int_to_ptr.vmem [resolvable:$true] %s28_s12 }
   0x4   :  { %s979_s15 = scalar_lea.hbm %s1289_s5, 1024 }
   0x5   :  { %p980_p0 = scmp.ne.s32.totalorder %s1289_s5, %s979_s15  ;;  %p983_p1 = scmp.lt.u32.totalorder %s979_s15, %s1289_s5 }
   0x7   :  { %p985_p2 = pnand %p983_p1, %p980_p0 }
   0x9   :  { %988 = shalt.err (!%p985_p2)
}
   0xa   :  { %s989_s20 = scalar_lea.vmem %s43_s10, 1024  ;;  %p994_p4 = scmp.lt.s32.totalorder %s43_s10, %s43_s10 }
   0xb   :  { %p990_p3 = scmp.ne.s32.totalorder %s43_s10, %s989_s20  ;;  %p995_p5 = scmp.lt.s32.totalorder %s989_s20, %s989_s20 }
   0xd   :  { %p996_p6 = por %p995_p5, %p994_p4 }
   0xf   :  { %p997_p7 = pnand %p996_p6, %p990_p3 }
  0x11   :  { %1000 = shalt.err (!%p997_p7)
}
  0x12   :  { %s1075_s21 = smov 128   ;;  %s1076_s22 = smov 8  }
  0x13   :  { %48 = dma.hbm_to_vmem [thread:$0]  %s1289_s5, 1024, %s43_s10, [#allocation6], %s1075_s21, %s1075_s21, %s1076_s22  }
  0x14   :  { %s1001_s27 = scalar_lea.hbm %s1287_s3, 1024 }
  0x15   :  { %p1002_p8 = scmp.ne.s32.totalorder %s1287_s3, %s1001_s27  ;;  %p1005_p9 = scmp.lt.u32.totalorder %s1001_s27, %s1287_s3 }
  0x17   :  { %p1007_p10 = pnand %p1005_p9, %p1002_p8 }
  0x19   :  { %1010 = shalt.err (!%p1007_p10)
}
  0x1a   :  { %s1011_s13 = scalar_lea.vmem %s1134_s12, 1024  ;;  %p1016_p12 = scmp.lt.s32.totalorder %s1134_s12, %s1134_s12 }
  0x1b   :  { %p1012_p11 = scmp.ne.s32.totalorder %s1134_s12, %s1011_s13  ;;  %p1017_p13 = scmp.lt.s32.totalorder %s1011_s13, %s1011_s13 }
  0x1d   :  { %p1018_p0 = por %p1017_p13, %p1016_p12 }
  0x1f   :  { %p1019_p1 = pnand %p1018_p0, %p1012_p11 }
  0x21   :  { %1022 = shalt.err (!%p1019_p1)
}
  0x22   :  { %34 = dma.hbm_to_vmem [thread:$0]  %s1287_s3, 1024, %s1134_s12, [#allocation3], %s1075_s21, %s1075_s21, %s1076_s22  }
  0x23   :  { %s1077_s14 = smov [#allocation7]   ;;  %s1023_s18 = scalar_lea.hbm %s1291_s7, 5120 }
  0x24   :  { %s56_s15 = sshll.u32 %s1077_s14, 4  ;;  %p1024_p2 = scmp.ne.s32.totalorder %s1291_s7, %s1023_s18  ;;  %s57_s15 = int_to_ptr.vmem [resolvable:$true] %s56_s15 }
  0x25   :  { %p1027_p3 = scmp.lt.u32.totalorder %s1023_s18, %s1291_s7 }
  0x27   :  { %p1029_p4 = pnand %p1027_p3, %p1024_p2 }
  0x29   :  { %1032 = shalt.err (!%p1029_p4)
}
  0x2a   :  { %s1033_s25 = scalar_lea.vmem %s57_s15, 5120  ;;  %p1038_p6 = scmp.lt.s32.totalorder %s57_s15, %s57_s15 }
  0x2b   :  { %p1034_p5 = scmp.ne.s32.totalorder %s57_s15, %s1033_s25  ;;  %p1039_p7 = scmp.lt.s32.totalorder %s1033_s25, %s1033_s25 }
  0x2d   :  { %p1040_p8 = por %p1039_p7, %p1038_p6 }
  0x2f   :  { %p1041_p9 = pnand %p1040_p8, %p1034_p5 }
  0x31   :  { %1044 = shalt.err (!%p1041_p9)
}
  0x32   :  { %s1078_s3 = smov 640   ;;  %s1079_s12 = smov 40  }
  0x33   :  { %62 = dma.hbm_to_vmem [thread:$0]  %s1291_s7, 5120, %s57_s15, [#allocation6], %s1078_s3, %s1078_s3, %s1079_s12  }
  0x34   :  { %1067 = dma.done.wait [#allocation3], 1024  }
  0x35   :  { %1068 = vsyncadd [#allocation3], 4294966272 }
  0x36   :  { %1069 = dma.done.wait [#allocation6], 6144  }
  0x37   :  { %1070 = vsyncadd [#allocation6], 4294961152  ;;  %v1080_v0 = vmov 0.0   ;;  %vm1081_vm0 = vmmov 0   ;;  %v1082_v1 = vmov 0.0|0.0   ;;  %vm85_vm1 = vcmask 64512  }
  0x38   :  { %806 = vmatprep.subr.mxu0 %v1080_v0  ;;  %808 = vmatprep.mubr.msk.f32.mxu0 %vm1081_vm0, %v1080_v0  ;;  %v77_v2 = vld [vmem:[%s1285_s1] sm:$0xff]  ;;  %v179_v5 = vld [vmem:[#allocation2 + $0x8] sm:$0xff]  ;;  %v180_v7 = vld [vmem:[#allocation2 + $0x10] sm:$0xff]  ;;  %vm193_vm2 = vcmask 523264  }
  0x39   :  { %892 = vmatprep.subr.bf16.mxu1 %v1082_v1  ;;  %833 = vmatprep.mubr.msk.f32.mxu1 %vm1081_vm0, %v1080_v0  ;;  %v74_v3 = vld [vmem:[%s1284_s0] sm:$0xff]  ;;  %v181_v8 = vld [vmem:[#allocation2 + $0x18] sm:$0xff]  ;;  %v75_v9 = vld [vmem:[%s1284_s0 + $0x8] sm:$0xff] }
  0x3a   :  { %807 = vmatpush3.msra.mxu0 %v77_v2  ;;  %v178_v4 = vld [vmem:[#allocation2] sm:$0xff]  ;;  %v896_v10 = vpack.c.bf16 %v181_v8, %v180_v7  ;;  %v183_v12 = vld [vmem:[#allocation2 + $0x28] sm:$0xff]  ;;  %v76_v13 = vld [vmem:[%s1284_s0 + $0x10] sm:$0xff] }
  0x3b   :  { %809 = vmatmul.mubr.msk.f32.vlgmr.msra.gmra.mrb[0].mxu0 %vm85_vm1, %v74_v3  ;;  %v893_v6 = vpack.c.bf16 %v179_v5, %v178_v4  ;;  %904 = vmatprep.subr.bf16.mxu0 %v1082_v1  ;;  %v182_v11 = vld [vmem:[#allocation2 + $0x20] sm:$0xff]  ;;  %v184_v15 = vld [vmem:[#allocation2 + $0x30] sm:$0xff]  ;;  %v185_v16 = vld [vmem:[#allocation2 + $0x38] sm:$0xff] }
  0x3c   :  { %811 = vmatprep.mubr.msk.f32.mxu0 %vm1081_vm0, %v1080_v0  ;;  %v899_v14 = vpack.c.bf16 %v183_v12, %v182_v11  ;;  %v902_v17 = vpack.c.bf16 %v185_v16, %v184_v15  ;;  %v286_v18 = vld [vmem:[#allocation5] sm:$0xff]  ;;  %v287_v19 = vld [vmem:[#allocation5 + $0x8] sm:$0xff]  ;;  %v288_v20 = vld [vmem:[#allocation5 + $0x10] sm:$0xff] }
  0x3d   :  { %894 = vmatpush3.bf16.msra.mxu1 %v893_v6  ;;  %v905_v21 = vpack.c.bf16 %v287_v19, %v286_v18  ;;  %v289_v22 = vld [vmem:[#allocation5 + $0x18] sm:$0xff]  ;;  %v290_v24 = vld [vmem:[#allocation5 + $0x20] sm:$0xff]  ;;  %v291_v25 = vld [vmem:[#allocation5 + $0x28] sm:$0xff] }
  0x3e   :  { %895 = vmatprep.subr.bf16.mxu1 %v1082_v1  ;;  %v908_v23 = vpack.c.bf16 %v289_v22, %v288_v20  ;;  %v911_v26 = vpack.c.bf16 %v291_v25, %v290_v24  ;;  %v748_v27 = vld [vmem:[%s1286_s2] ss:$0 sm:$0xff]  ;;  %v292_v40 = vld [vmem:[#allocation5 + $0x30] sm:$0xff]  ;;  %v293_v41 = vld [vmem:[#allocation5 + $0x38] sm:$0xff] }
  0x3f   :  { %812 = vmatmul.mubr.msk.f32.gmra.mrb[2].mxu0 %vm85_vm1, %v75_v9  ;;  %v914_v42 = vpack.c.bf16 %v293_v41, %v292_v40  ;;  %v394_v43 = vld [vmem:[#allocation7 + $0x8] sm:$0xff]  ;;  %v399_v44 = vld [vmem:[#allocation7 + $0x30] sm:$0xff]  ;;  %v396_v45 = vld [vmem:[#allocation7 + $0x18] sm:$0xff] }
  0x40   :  { %814 = vmatprep.mubr.msk.f32.mxu0 %vm1081_vm0, %v1080_v0  ;;  %906 = vmatpush3.bf16.msra.mxu0 %v905_v21  ;;  %v916_v46 = vpack.c.bf16 %v399_v44, %v394_v43  ;;  %v401_v47 = vld [vmem:[#allocation7 + $0x40] sm:$0xff]  ;;  %v398_v49 = vld [vmem:[#allocation7 + $0x28] sm:$0xff]  ;;  %v404_v52 = vld [vmem:[#allocation7 + $0x58] sm:$0xff] }
  0x41   :  { %897 = vmatpush3.bf16.msra.mxu1 %v896_v10  ;;  %907 = vmatprep.subr.bf16.mxu0 %v1082_v1  ;;  %v393_v48 = vld [vmem:[#allocation7] sm:$0xff]  ;;  %v932_v50 = vpack.c.bf16 %v401_v47, %v396_v45  ;;  %v403_v55 = vld [vmem:[#allocation7 + $0x50] sm:$0xff]  ;;  %v408_v56 = vld [vmem:[#allocation7 + $0x78] sm:$0xff] }
  0x42   :  { %898 = vmatprep.subr.bf16.mxu1 %v1082_v1  ;;  %v918_v51 = vpack.c.bf16 %v398_v49, %v393_v48  ;;  %v409_v53 = vld [vmem:[#allocation7 + $0x80] sm:$0xff]  ;;  %v922_v57 = vpack.c.bf16 %v408_v56, %v403_v55  ;;  %v414_v58 = vld [vmem:[#allocation7 + $0xa8] sm:$0xff]  ;;  %v419_v59 = vld [vmem:[#allocation7 + $0xd0] sm:$0xff] }
  0x43   :  { %815 = vmatmul.mubr.msk.f32.gmra.mrb[4].mxu0 %vm85_vm1, %v76_v13  ;;  %v920_v54 = vpack.c.bf16 %v409_v53, %v404_v52  ;;  %v924_v60 = vpack.c.bf16 %v419_v59, %v414_v58  ;;  %v413_v61 = vld [vmem:[#allocation7 + $0xa0] sm:$0xff]  ;;  %v418_v62 = vld [vmem:[#allocation7 + $0xc8] sm:$0xff]  ;;  %v395_v3 = vld [vmem:[#allocation7 + $0x10] sm:$0xff] }
  0x44   :  { %858 = vmatprep.mubr.msk.f32.mxu0 %vm1081_vm0, %v1080_v0  ;;  %909 = vmatpush3.bf16.msra.mxu0 %v908_v23  ;;  %v926_v63 = vpack.c.bf16 %v418_v62, %v413_v61  ;;  %v752_v2 = vld [vmem:[%s1288_s4] ss:$0 sm:$0xff]  ;;  %v400_v4 = vld [vmem:[#allocation7 + $0x38] sm:$0xff]  ;;  %v406_v6 = vld [vmem:[#allocation7 + $0x68] sm:$0xff] }
  0x45   :  { %900 = vmatpush3.bf16.msra.mxu1 %v899_v14  ;;  %910 = vmatprep.subr.bf16.mxu0 %v1082_v1  ;;  %v411_v7 = vld [vmem:[#allocation7 + $0x90] sm:$0xff]  ;;  %v934_v10 = vpack.c.bf16 %v400_v4, %v395_v3  ;;  %v405_v13 = vld [vmem:[#allocation7 + $0x60] sm:$0xff]  ;;  %v410_v14 = vld [vmem:[#allocation7 + $0x88] sm:$0xff] }
  0x46   :  { %901 = vmatprep.subr.bf16.mxu1 %v1082_v1  ;;  %v936_v12 = vpack.c.bf16 %v411_v7, %v406_v6  ;;  %v416_v16 = vld [vmem:[#allocation7 + $0xb8] sm:$0xff]  ;;  %v938_v20 = vpack.c.bf16 %v410_v14, %v405_v13  ;;  %v415_v23 = vld [vmem:[#allocation7 + $0xb0] sm:$0xff]  ;;  %v430_v40 = vld [vmem:[#allocation7 + $0x128] sm:$0xff] }
  0x47   :  { %v420_v24 = vld [vmem:[#allocation7 + $0xd8] sm:$0xff]  ;;  %v397_v43 = vld [vmem:[#allocation7 + $0x20] sm:$0xff]  ;;  %v402_v44 = vld [vmem:[#allocation7 + $0x48] sm:$0xff] }
  0x48   :  { %912 = vmatpush3.bf16.msra.mxu0 %v911_v26  ;;  %v949_v48 = vpack.c.bf16 %v402_v44, %v397_v43  ;;  %v422_v58 = vld [vmem:[#allocation7 + $0xe8] sm:$0xff]  ;;  %v432_v3 = vld [vmem:[#allocation7 + $0x138] sm:$0xff] }
  0x49   :  { %903 = vmatpush3.bf16.msra.mxu1 %v902_v17  ;;  %913 = vmatprep.subr.bf16.mxu0 %v1082_v1  ;;  %v421_v17 = vld [vmem:[#allocation7 + $0xe0] sm:$0xff] }
  0x4a   :  { %917 = vmatprep.subr.bf16.mxu1 %v916_v46  ;;  %v940_v22 = vpack.c.bf16 %v421_v17, %v416_v16 }
  0x4c   :  { %915 = vmatpush3.bf16.msra.mxu0 %v914_v42  ;;  %v756_v42 = vld [vmem:[%s1290_s6] ss:$0 sm:$0xff] }
  0x4d   :  { %933 = vmatprep.subr.bf16.mxu0 %v932_v50  ;;  %v407_v50 = vld [vmem:[#allocation7 + $0x70] sm:$0xff] }
 0x10e   :  { %v161_v28 = vpop.f32.mrb[0].mxu0 }
 0x10f   :  { %v162_v29 = vadd.f32 %v748_v27, %v161_v28  ;;  %v810_v30 = vpop.f32.mrb[1].mxu0  ;;  %v942_v28 = vpack.c.bf16 %v420_v24, %v415_v23 }
 0x110   :  { %v424_v30 = vld [vmem:[#allocation7 + $0xf8] sm:$0xff] }
 0x111   :  { %v175_v31 = vmax.f32 %v162_v29, 0.0 }
 0x112   :  { %v166_v32 = vpop.f32.mrb[2].mxu0 }
 0x113   :  { %834 = vmatmul.mubr.msk.f32.vlgmr.msra.gmra.mrb[0].mxu1 %vm193_vm2, %v175_v31  ;;  %v167_v33 = vadd.f32 %v748_v27, %v166_v32  ;;  %v813_v34 = vpop.f32.mrb[3].mxu0  ;;  %v429_v31 = vld [vmem:[#allocation7 + $0x120] sm:$0xff]  ;;  %v426_v32 = vld [vmem:[#allocation7 + $0x108] sm:$0xff] }
 0x114   :  { %836 = vmatprep.mubr.msk.f32.mxu1 %vm1081_vm0, %v1080_v0  ;;  %919 = vmatpush1.bf16.msra.mxu1 %v918_v51  ;;  %v431_v34 = vld [vmem:[#allocation7 + $0x130] sm:$0xff]  ;;  %v412_v51 = vld [vmem:[#allocation7 + $0x98] sm:$0xff] }
 0x115   :  { %v176_v35 = vmax.f32 %v167_v33, 0.0  ;;  %921 = vmatprep.subr.bf16.mxu1 %v920_v54  ;;  %v928_v33 = vpack.c.bf16 %v429_v31, %v424_v30  ;;  %v952_v55 = vpack.c.bf16 %v412_v51, %v407_v50 }
 0x116   :  { %v171_v36 = vpop.f32.mrb[4].mxu0 }
 0x117   :  { %v172_v37 = vadd.f32 %v748_v27, %v171_v36  ;;  %v816_v38 = vpop.f32.mrb[5].mxu0  ;;  %837 = vmatmul.mubr.msk.f32.gmra.mrb[2].mxu1 %vm193_vm2, %v176_v35  ;;  %v423_v35 = vld [vmem:[#allocation7 + $0xf0] sm:$0xff]  ;;  %v428_v36 = vld [vmem:[#allocation7 + $0x118] sm:$0xff] }
 0x118   :  { %839 = vmatprep.mubr.msk.f32.mxu1 %vm1081_vm0, %v1080_v0  ;;  %923 = vmatpush1.bf16.msra.mxu1 %v922_v57  ;;  %v930_v38 = vpack.c.bf16 %v428_v36, %v423_v35  ;;  %v417_v57 = vld [vmem:[#allocation7 + $0xc0] sm:$0xff] }
 0x119   :  { %v177_v39 = vmax.f32 %v172_v37, 0.0  ;;  %925 = vmatprep.subr.bf16.mxu1 %v924_v60  ;;  %v944_v37 = vpack.c.bf16 %v431_v34, %v426_v32  ;;  %v955_v62 = vpack.c.bf16 %v422_v58, %v417_v57 }
 0x11b   :  { %840 = vmatmul.mubr.msk.f32.gmra.mrb[4].mxu1 %vm193_vm2, %v177_v39  ;;  %v425_v39 = vld [vmem:[#allocation7 + $0x100] sm:$0xff] }
 0x11c   :  { %533 = vmatprep.mubr.f32.mxu1 %v1080_v0  ;;  %927 = vmatpush1.bf16.msra.mxu1 %v926_v63  ;;  %v946_v41 = vpack.c.bf16 %v430_v40, %v425_v39 }
 0x11d   :  { %929 = vmatprep.subr.bf16.mxu1 %v928_v33 }
 0x120   :  { %931 = vmatpush1.bf16.msra.mxu1 %v930_v38 }
 0x121   :  { %960 = vmatprep.subr.bf16.mxu1 %v1082_v1 }
 0x1e6   :  { %v269_v5 = vpop.f32.mrb[0].mxu1 }
 0x1e7   :  { %v270_v8 = vadd.f32 %v752_v2, %v269_v5  ;;  %v835_v9 = vpop.f32.mrb[1].mxu1  ;;  %v435_v5 = vlaneseq }
 0x1e9   :  { %v283_v11 = vmax.f32 %v270_v8, 0.0  ;;  %v436_v6 = vshrl.u32 %v435_v5, 7  ;;  %v433_v8 = vld [vmem:[%s1292_s8] sm:$0x1f]  ;;  %s1083_s8 = smov [#allocation8]  }
 0x1ea   :  { %v274_v15 = vpop.f32.mrb[2].mxu1  ;;  %s735_s15 = sshll.u32 %s1083_s8, 4  ;;  %s736_s15 = int_to_ptr.vmem [resolvable:$true] %s735_s15 }
 0x1eb   :  { %859 = vmatmul.mubr.msk.f32.vlgmr.msra.gmra.mrb[6].mxu0 %vm193_vm2, %v283_v11  ;;  %v275_v18 = vadd.f32 %v752_v2, %v274_v15  ;;  %v838_v19 = vpop.f32.mrb[3].mxu1  ;;  %v445_v7 = vsub.s32 2, %v436_v6  ;;  %v441_v9 = vsub.s32 1, %v436_v6  ;;  %v453_v36 = vsub.s32 4, %v436_v6  ;;  %s1045_s16 = scalar_lea.vmem %s736_s15, 1920  ;;  %p1050_p11 = scmp.lt.s32.totalorder %s736_s15, %s736_s15 }
 0x1ec   :  { %861 = vmatprep.mubr.msk.f32.mxu0 %vm1081_vm0, %v1080_v0  ;;  %935 = vmatpush1.bf16.msra.mxu0 %v934_v10  ;;  %v449_v10 = vsub.s32 3, %v436_v6  ;;  %p1046_p10 = scmp.ne.s32.totalorder %s736_s15, %s1045_s16  ;;  %p1051_p12 = scmp.lt.s32.totalorder %s1045_s16, %s1045_s16 }
 0x1ed   :  { %v284_v21 = vmax.f32 %v275_v18, 0.0  ;;  %937 = vmatprep.subr.bf16.mxu0 %v936_v12  ;;  %v446_v12 = vrot.slane %v433_v8, %v445_v7  ;;  %v442_v13 = vrot.slane %v433_v8, %v441_v9  ;;  %v454_v39 = vrot.slane %v433_v8, %v453_v36 }
 0x1ee   :  { %v279_v25 = vpop.f32.mrb[4].mxu1  ;;  %v450_v14 = vrot.slane %v433_v8, %v449_v10  ;;  %p1052_p13 = por %p1051_p12, %p1050_p11 }
 0x1ef   :  { %v280_v26 = vadd.f32 %v752_v2, %v279_v25  ;;  %v841_v27 = vpop.f32.mrb[5].mxu1  ;;  %862 = vmatmul.mubr.msk.f32.gmra.mrb[8].mxu0 %vm193_vm2, %v284_v21  ;;  %v427_v2 = vld [vmem:[#allocation7 + $0x110] sm:$0xff] }
 0x1f0   :  { %864 = vmatprep.mubr.msk.f32.mxu0 %vm1081_vm0, %v1080_v0  ;;  %939 = vmatpush1.bf16.msra.mxu0 %v938_v20  ;;  %v958_v4 = vpack.c.bf16 %v432_v3, %v427_v2  ;;  %p1053_p0 = pnand %p1052_p13, %p1046_p10 }
 0x1f1   :  { %v285_v29 = vmax.f32 %v280_v26, 0.0  ;;  %941 = vmatprep.subr.bf16.mxu0 %v940_v22 }
 0x1f3   :  { %865 = vmatmul.mubr.msk.f32.gmra.mrb[10].mxu0 %vm193_vm2, %v285_v29 }
 0x1f4   :  { %943 = vmatpush1.bf16.msra.mxu0 %v942_v28  ;;  %616 = vmatprep.mubr.f32.mxu0 %v1080_v0 }
 0x1f5   :  { %945 = vmatprep.subr.bf16.mxu0 %v944_v37 }
 0x1f8   :  { %947 = vmatpush1.bf16.msra.mxu0 %v946_v41 }
 0x1f9   :  { %948 = vmatprep.subr.bf16.mxu0 %v1082_v1 }
 0x2be   :  { %v376_v45 = vpop.f32.mrb[6].mxu0 }
 0x2bf   :  { %v377_v46 = vadd.f32 %v756_v42, %v376_v45  ;;  %v860_v47 = vpop.f32.mrb[7].mxu0 }
 0x2c1   :  { %v390_v49 = vmax.f32 %v377_v46, 0.0 }
 0x2c2   :  { %v381_v52 = vpop.f32.mrb[8].mxu0 }
 0x2c3   :  { %760 = vmatmul.mubr.msk.f32.vlgmr.msra.gmra.mrb[6].mxu1 %vm193_vm2, %v390_v49  ;;  %763 = vmatmul.mubr.msk.f32.vlgmr.msra.gmra.mrb[12].mxu0 %vm193_vm2, %v390_v49  ;;  %v382_v53 = vadd.f32 %v756_v42, %v381_v52  ;;  %v863_v54 = vpop.f32.mrb[9].mxu0 }
 0x2c4   :  { %950 = vmatpush3.bf16.msra.mxu0 %v949_v48  ;;  %964 = vmatpush3.bf16.msra.mxu1 %v949_v48 }
 0x2c5   :  { %v391_v56 = vmax.f32 %v382_v53, 0.0  ;;  %951 = vmatprep.subr.bf16.mxu0 %v1082_v1  ;;  %961 = vmatprep.subr.bf16.mxu1 %v1082_v1 }
 0x2c6   :  { %v386_v59 = vpop.f32.mrb[10].mxu0  ;;  %539 = vmatprep.mubr.f32.mxu1 %v1080_v0  ;;  %622 = vmatprep.mubr.f32.mxu0 %v1080_v0 }
 0x2c7   :  { %v387_v60 = vadd.f32 %v756_v42, %v386_v59  ;;  %v866_v61 = vpop.f32.mrb[11].mxu0  ;;  %761 = vmatmul.mubr.msk.f32.gmra.mrb[8].mxu1 %vm193_vm2, %v391_v56  ;;  %764 = vmatmul.mubr.msk.f32.gmra.mrb[14].mxu0 %vm193_vm2, %v391_v56 }
 0x2c8   :  { %953 = vmatpush3.bf16.msra.mxu0 %v952_v55  ;;  %965 = vmatpush3.bf16.msra.mxu1 %v952_v55 }
 0x2c9   :  { %v392_v63 = vmax.f32 %v387_v60, 0.0  ;;  %954 = vmatprep.subr.bf16.mxu0 %v1082_v1  ;;  %962 = vmatprep.subr.bf16.mxu1 %v1082_v1 }
 0x2ca   :  { %545 = vmatprep.mubr.f32.mxu1 %v1080_v0  ;;  %628 = vmatprep.mubr.f32.mxu0 %v1080_v0 }
 0x2cb   :  { %762 = vmatmul.mubr.msk.f32.gmra.mrb[10].mxu1 %vm193_vm2, %v392_v63  ;;  %765 = vmatmul.mubr.msk.f32.gmra.mrb[16].mxu0 %vm193_vm2, %v392_v63 }
 0x2cc   :  { %956 = vmatpush3.bf16.msra.mxu0 %v955_v62  ;;  %966 = vmatpush3.bf16.msra.mxu1 %v955_v62 }
 0x2cd   :  { %957 = vmatprep.subr.bf16.mxu0 %v1082_v1  ;;  %963 = vmatprep.subr.bf16.mxu1 %v1082_v1  ;;  %v437_v1 = vsub.s32 0, %v436_v6 }
 0x2ce   :  { %883 = vmatprep.mubr.msk.f32.mxu0 %vm1081_vm0, %v1080_v0  ;;  %886 = vmatprep.mubr.msk.f32.mxu1 %vm1081_vm0, %v1080_v0 }
 0x2cf   :  { %v438_v11 = vrot.slane %v433_v8, %v437_v1 }
 0x2d0   :  { %959 = vmatpush3.bf16.msra.mxu0 %v958_v4  ;;  %967 = vmatpush3.bf16.msra.mxu1 %v958_v4 }
 0x2d3   :  { %884 = vmatmul.mubr.msk.f32.vlgmr.msra.gmra.mrb[18].mxu0 %vm193_vm2, %v390_v49  ;;  %887 = vmatmul.mubr.msk.f32.vlgmr.msra.gmra.mrb[12].mxu1 %vm193_vm2, %v391_v56 }
 0x2d4   :  { %889 = vmatprep.mubr.msk.f32.mxu1 %vm1081_vm0, %v1080_v0 }
 0x2d7   :  { %890 = vmatmul.mubr.msk.f32.gmra.mrb[14].mxu1 %vm193_vm2, %v392_v63 }
 0x396   :  { %v535_v15 = vpop.f32.mrb[6].mxu1  ;;  %v618_v16 = vpop.f32.mrb[12].mxu0 }
 0x397   :  { %v536_v17 = vadd.f32 %v535_v15, %v438_v11  ;;  %v619_v0 = vadd.f32 %v618_v16, %v446_v12  ;;  %v537_v18 = vpop.f32.mrb[7].mxu1  ;;  %v620_v19 = vpop.f32.mrb[13].mxu0 }
 0x398   :  { %v538_v20 = vadd.f32 %v537_v18, %v442_v13  ;;  %v621_v21 = vadd.f32 %v620_v19, %v450_v14 }
 0x399   :  { %715 = vst [vmem:[#allocation8] sm:$0xff] %v536_v17  ;;  %717 = vst [vmem:[#allocation8 + $0x10] sm:$0xff] %v619_v0 }
 0x39a   :  { %716 = vst [vmem:[#allocation8 + $0x8] sm:$0xff] %v538_v20  ;;  %718 = vst [vmem:[#allocation8 + $0x18] sm:$0xff] %v621_v21  ;;  %v541_v22 = vpop.f32.mrb[8].mxu1  ;;  %v624_v23 = vpop.f32.mrb[14].mxu0 }
 0x39b   :  { %v542_v24 = vadd.f32 %v541_v22, %v438_v11  ;;  %v625_v25 = vadd.f32 %v624_v23, %v446_v12  ;;  %v543_v26 = vpop.f32.mrb[9].mxu1  ;;  %v626_v27 = vpop.f32.mrb[15].mxu0 }
 0x39c   :  { %v544_v28 = vadd.f32 %v543_v26, %v442_v13  ;;  %v627_v29 = vadd.f32 %v626_v27, %v450_v14 }
 0x39d   :  { %720 = vst [vmem:[#allocation8 + $0x28] sm:$0xff] %v542_v24  ;;  %722 = vst [vmem:[#allocation8 + $0x38] sm:$0xff] %v625_v25 }
 0x39e   :  { %721 = vst [vmem:[#allocation8 + $0x30] sm:$0xff] %v544_v28  ;;  %723 = vst [vmem:[#allocation8 + $0x40] sm:$0xff] %v627_v29  ;;  %v547_v30 = vpop.f32.mrb[10].mxu1  ;;  %v630_v31 = vpop.f32.mrb[16].mxu0 }
 0x39f   :  { %v548_v32 = vadd.f32 %v547_v30, %v438_v11  ;;  %v631_v33 = vadd.f32 %v630_v31, %v446_v12  ;;  %v549_v34 = vpop.f32.mrb[11].mxu1  ;;  %v632_v35 = vpop.f32.mrb[17].mxu0 }
 0x3a0   :  { %v550_v37 = vadd.f32 %v549_v34, %v442_v13  ;;  %v633_v38 = vadd.f32 %v632_v35, %v450_v14 }
 0x3a1   :  { %725 = vst [vmem:[#allocation8 + $0x50] sm:$0xff] %v548_v32  ;;  %727 = vst [vmem:[#allocation8 + $0x60] sm:$0xff] %v631_v33 }
 0x3a2   :  { %726 = vst [vmem:[#allocation8 + $0x58] sm:$0xff] %v550_v37  ;;  %728 = vst [vmem:[#allocation8 + $0x68] sm:$0xff] %v633_v38 }
 0x3a6   :  { %v701_v40 = vpop.f32.mrb[18].mxu0  ;;  %v706_v41 = vpop.f32.mrb[12].mxu1 }
 0x3a7   :  { %v702_v42 = vadd.f32 %v701_v40, %v454_v39  ;;  %v707_v43 = vadd.f32 %v706_v41, %v454_v39  ;;  %v885_v44 = vpop.f32.mrb[19].mxu0  ;;  %v888_v45 = vpop.f32.mrb[13].mxu1 }
 0x3a9   :  { %719 = vst [vmem:[#allocation8 + $0x20] sm:$0xff] %v702_v42  ;;  %724 = vst [vmem:[#allocation8 + $0x48] sm:$0xff] %v707_v43 }
 0x3aa   :  { %v711_v46 = vpop.f32.mrb[14].mxu1 }
 0x3ab   :  { %v712_v47 = vadd.f32 %v711_v46, %v454_v39  ;;  %v891_v48 = vpop.f32.mrb[15].mxu1 }
 0x3ad   :  { %729 = vst [vmem:[#allocation8 + $0x70] sm:$0xff] %v712_v47 }
 0x3ae   :  { %1056 = shalt.err (!%p1053_p0)
}
 0x3af   :  { %s1057_s19 = scalar_lea.hbm %s1293_s9, 1920 }
 0x3b0   :  { %p1058_p1 = scmp.ne.s32.totalorder %s1293_s9, %s1057_s19  ;;  %p1061_p2 = scmp.lt.u32.totalorder %s1057_s19, %s1293_s9 }
 0x3b2   :  { %p1063_p3 = pnand %p1061_p2, %p1058_p1 }
 0x3b4   :  { %1066 = shalt.err (!%p1063_p3)
}
 0x3b5   :  { %741 = dma.vmem_to_hbm [thread:$0]  %s736_s15, 1920, %s1293_s9, [#allocation4], %s1078_s3, %s1078_s3, %s1079_s12  }
 0x3b6   :  { %1071 = dma.done.wait [#allocation4], 1920  }
 0x3b7   :  { %1072 = vsyncadd [#allocation4], 4294965376 }
 0x3b8   :  { %745 = vsyncpa [#allocation3], 1 }
 0x3b9   :  { %746 = vsyncpa [#allocation6], 1 }
 0x3ba   :  { %747 = vsyncpa [#allocation4], 1 }

</bundles_post_ra>
